<compile_context>
chip_gen: v5e
topology: v5e:2x2
jax: 0.10.0
libtpu: 0.0.40
codegen_flags: <defaults>
</compile_context>

<pallas_src>
import functools

import jax
import jax.numpy as jnp
from jax.experimental import pallas as pl
from jax.experimental.pallas import tpu as pltpu


def _mlp_classifier_kernel(x_ref, w0_ref, shift0_ref, w1_ref, b1_ref, o_ref):
    # x_ref:      (TM, C_in)  f32  tile of input features
    # w0_ref:     (C_in, H)   bf16, BN scale already folded into columns
    # shift0_ref: (1, H)      f32, folded (lin0 bias + BN) shift
    # w1_ref:     (H, C)      bf16
    # b1_ref:     (1, C)      f32
    # o_ref:      (TM, C)     f32 log-probabilities

    # ---- layer 0: Linear (scale-folded) + shift + LeakyReLU(0.2)
    x = x_ref[...].astype(jnp.bfloat16)          # in-kernel cast; MXU-native
    h = jnp.dot(x, w0_ref[...], preferred_element_type=jnp.float32)
    h = h + shift0_ref[...]
    h = jnp.where(h >= 0.0, h, 0.2 * h)

    # Dropout is identity at inference.
    # TODO(synk): training-mode dropout and batch-statistic BN (with running
    #             stat momentum updates) are not implemented; inference only.

    # ---- layer 1: Linear -> logits (bf16 MXU inputs, f32 accumulation)
    z = jnp.dot(h.astype(jnp.bfloat16), w1_ref[...],
                preferred_element_type=jnp.float32)
    z = z + b1_ref[...]

    # ---- log_softmax over the class (lane) axis
    m = jnp.max(z, axis=-1, keepdims=True)
    z = z - m
    lse = jnp.log(jnp.sum(jnp.exp(z), axis=-1, keepdims=True))
    o_ref[...] = (z - lse).astype(o_ref.dtype)


@functools.partial(jax.jit, static_argnames=("eps", "use_batch_norm", "tm"))
def mlp_classifier_forward(x, w0, b0, gamma, beta, running_mean, running_var,
                           w1, b1, *, eps=1e-5, use_batch_norm=True, tm=1024):
    """x: [N, C_in] float32 (this is `data.x`).  w0: [C_in, H], w1: [H, C].

    Returns log-probabilities [N, num_classes] float32 (the new `data.x`;
    graph-container plumbing of the PyTorch module is omitted).
    """
    N, C_in = x.shape
    H = w0.shape[1]
    C = w1.shape[1]

    # ---- fold inference BatchNorm1d (+ lin0 bias) into W0 columns and a shift
    if use_batch_norm:
        scale = (gamma / jnp.sqrt(running_var + eps)).astype(jnp.float32)
        shift0 = ((b0 - running_mean) * scale + beta).astype(jnp.float32)
    else:
        scale = jnp.ones((H,), jnp.float32)
        shift0 = b0.astype(jnp.float32)

    w0_b = (w0.astype(jnp.float32) * scale[None, :]).astype(jnp.bfloat16)
    w1_b = w1.astype(jnp.bfloat16)
    shift0 = shift0.reshape(1, H)
    b1_r = b1.astype(jnp.float32).reshape(1, C)
    x_f = x.astype(jnp.float32)

    # ---- row tiling: full-extent block when N fits in one tile, otherwise a
    #      multiple-of-8 tile with a cdiv grid (ragged last block handled by
    #      Pallas: clipped reads, dropped out-of-bounds writes).
    if N <= tm:
        tm_eff = N
    else:
        tm_eff = max(8, (tm // 8) * 8)
    grid = (pl.cdiv(N, tm_eff),)

    return pl.pallas_call(
        _mlp_classifier_kernel,
        out_shape=jax.ShapeDtypeStruct((N, C), jnp.float32),
        grid_spec=pltpu.PrefetchScalarGridSpec(
            num_scalar_prefetch=0,
            grid=grid,
            in_specs=[
                pl.BlockSpec((tm_eff, C_in), lambda i: (i, 0)),  # x tile (pipelined)
                pl.BlockSpec((C_in, H), lambda i: (0, 0)),       # W0 (resident)
                pl.BlockSpec((1, H), lambda i: (0, 0)),          # folded shift
                pl.BlockSpec((H, C), lambda i: (0, 0)),          # W1 (resident)
                pl.BlockSpec((1, C), lambda i: (0, 0)),          # lin1 bias
            ],
            out_specs=pl.BlockSpec((tm_eff, C), lambda i: (i, 0)),
        ),
        compiler_params=pltpu.CompilerParams(
            dimension_semantics=("parallel",),
            vmem_limit_bytes=32 * 1024 * 1024,
        ),
    )(x_f, w0_b, shift0, w1_b, b1_r)


def _reference(x, w0, b0, gamma, beta, running_mean, running_var, w1, b1,
               eps=1e-5):
    h = x @ w0 + b0
    h = (h - running_mean) / jnp.sqrt(running_var + eps) * gamma + beta
    h = jnp.where(h >= 0.0, h, 0.2 * h)
    z = h @ w1 + b1
    return jax.nn.log_softmax(z, axis=-1)


if __name__ == "__main__":
    key = jax.random.PRNGKey(0)
    keys = jax.random.split(key, 10)

    # Small shapes consistent with the module (H a multiple of 128 for a
    # lane-dense intermediate; N deliberately NOT a multiple of the tile size).
    N, C_in, H, C = 200, 64, 256, 13

    x = jax.random.normal(keys[0], (N, C_in), dtype=jnp.float32)        # data.x
    w0 = jax.random.normal(keys[1], (C_in, H), dtype=jnp.float32) * 0.1
    b0 = 0.1 * jax.random.normal(keys[2], (H,), dtype=jnp.float32)
    gamma = 1.0 + 0.1 * jax.random.normal(keys[3], (H,), dtype=jnp.float32)
    beta = 0.1 * jax.random.normal(keys[4], (H,), dtype=jnp.float32)
    running_mean = 0.1 * jax.random.normal(keys[5], (H,), dtype=jnp.float32)
    running_var = jnp.abs(jax.random.normal(keys[6], (H,), dtype=jnp.float32)) + 0.5
    w1 = jax.random.normal(keys[7], (H, C), dtype=jnp.float32) * 0.1
    b1 = 0.1 * jax.random.normal(keys[8], (C,), dtype=jnp.float32)

    ref = _reference(x, w0, b0, gamma, beta, running_mean, running_var, w1, b1)

    # 1) default tile (N <= tm -> single full-extent block, grid = 1)
    out = mlp_classifier_forward(x, w0, b0, gamma, beta, running_mean,
                                 running_var, w1, b1)
    out = jax.block_until_ready(out)
    assert out.shape == (N, C), out.shape
    assert jnp.allclose(out, ref, atol=5e-2, rtol=5e-2), (
        "mismatch vs reference (tm=default): max abs err = "
        f"{jnp.max(jnp.abs(out - ref))}")
    row_sums = jnp.sum(jnp.exp(out), axis=-1)
    assert jnp.allclose(row_sums, 1.0, atol=1e-3), "log_softmax rows not normalized"

    # 2) small tile (grid of 4 steps, ragged last block) to exercise the
    #    pipelined multi-step path.
    out2 = mlp_classifier_forward(x, w0, b0, gamma, beta, running_mean,
                                  running_var, w1, b1, tm=64)
    out2 = jax.block_until_ready(out2)
    assert out2.shape == (N, C), out2.shape
    assert jnp.allclose(out2, ref, atol=5e-2, rtol=5e-2), (
        "mismatch vs reference (tm=64): max abs err = "
        f"{jnp.max(jnp.abs(out2 - ref))}")

    print("KERNEL_OK")
</pallas_src>

<mosaic_0001>
module attributes {stable_mosaic.version = 11 : i64} {
  func.func @_mlp_classifier_kernel(%arg0: i32, %arg1: memref<200x64xf32, #tpu.memory_space<vmem>>, %arg2: memref<64x256xbf16, #tpu.memory_space<vmem>>, %arg3: memref<1x256xf32, #tpu.memory_space<vmem>>, %arg4: memref<256x13xbf16, #tpu.memory_space<vmem>>, %arg5: memref<1x13xf32, #tpu.memory_space<vmem>>, %arg6: memref<200x13xf32, #tpu.memory_space<vmem>>) attributes {dimension_semantics = [#tpu.dimension_semantics<parallel>], iteration_bounds = array<i64: 1>, scalar_prefetch = 0 : i64, scratch_operands = 0 : i64, tpu.core_type = #tpu.core_type<tc>, window_params = [{transform_indices = @transform_0, window_bounds = array<i64: 200, 64>}, {pipeline_mode = #tpu.pipeline_mode<synchronous>, transform_indices = @transform_1, window_bounds = array<i64: 64, 256>}, {pipeline_mode = #tpu.pipeline_mode<synchronous>, transform_indices = @transform_2, window_bounds = array<i64: 1, 256>}, {pipeline_mode = #tpu.pipeline_mode<synchronous>, transform_indices = @transform_3, window_bounds = array<i64: 256, 13>}, {pipeline_mode = #tpu.pipeline_mode<synchronous>, transform_indices = @transform_4, window_bounds = array<i64: 1, 13>}, {transform_indices = @transform_5, window_bounds = array<i64: 200, 13>}]} {
    %c0 = arith.constant 0 : index
    %c0_0 = arith.constant 0 : index
    %0 = vector.load %arg1[%c0, %c0_0] : memref<200x64xf32, #tpu.memory_space<vmem>>, vector<200x64xf32>
    %1 = arith.truncf %0 : vector<200x64xf32> to vector<200x64xbf16>
    %c0_1 = arith.constant 0 : index
    %c0_2 = arith.constant 0 : index
    %2 = vector.load %arg2[%c0_1, %c0_2] : memref<64x256xbf16, #tpu.memory_space<vmem>>, vector<64x256xbf16>
    %cst = arith.constant dense<0.000000e+00> : vector<200x256xf32>
    %3 = tpu.matmul %1, %2, %cst {dimension_numbers = #tpu.dot_dimension_numbers<[1], [0], [0], [1], [0, 0, 1, 1], [], []>} : vector<200x64xbf16>, vector<64x256xbf16>, vector<200x256xf32> -> vector<200x256xf32>
    %c0_3 = arith.constant 0 : index
    %c0_4 = arith.constant 0 : index
    %4 = vector.load %arg3[%c0_3, %c0_4] : memref<1x256xf32, #tpu.memory_space<vmem>>, vector<1x256xf32>
    %5 = vector.broadcast %4 : vector<1x256xf32> to vector<200x256xf32>
    %6 = arith.addf %3, %5 : vector<200x256xf32>
    %cst_5 = arith.constant 0.000000e+00 : f32
    %7 = vector.broadcast %cst_5 : f32 to vector<200x256xf32>
    %8 = arith.cmpf oge, %6, %7 : vector<200x256xf32>
    %cst_6 = arith.constant 2.000000e-01 : f32
    %9 = vector.broadcast %cst_6 : f32 to vector<200x256xf32>
    %10 = arith.mulf %9, %6 : vector<200x256xf32>
    %11 = arith.select %8, %6, %10 : vector<200x256xi1>, vector<200x256xf32>
    %12 = arith.truncf %11 : vector<200x256xf32> to vector<200x256xbf16>
    %c0_7 = arith.constant 0 : index
    %c0_8 = arith.constant 0 : index
    %13 = vector.load %arg4[%c0_7, %c0_8] : memref<256x13xbf16, #tpu.memory_space<vmem>>, vector<256x13xbf16>
    %cst_9 = arith.constant dense<0.000000e+00> : vector<200x13xf32>
    %14 = tpu.matmul %12, %13, %cst_9 {dimension_numbers = #tpu.dot_dimension_numbers<[1], [0], [0], [1], [0, 0, 1, 1], [], []>} : vector<200x256xbf16>, vector<256x13xbf16>, vector<200x13xf32> -> vector<200x13xf32>
    %c0_10 = arith.constant 0 : index
    %c0_11 = arith.constant 0 : index
    %15 = vector.load %arg5[%c0_10, %c0_11] : memref<1x13xf32, #tpu.memory_space<vmem>>, vector<1x13xf32>
    %16 = vector.broadcast %15 : vector<1x13xf32> to vector<200x13xf32>
    %17 = arith.addf %14, %16 : vector<200x13xf32>
    %cst_12 = arith.constant dense<0xFF800000> : vector<200xf32>
    %18 = vector.multi_reduction <maximumf>, %17, %cst_12 [1] : vector<200x13xf32> to vector<200xf32>
    %19 = vector.shape_cast %18 : vector<200xf32> to vector<200x1xf32>
    %20 = vector.broadcast %19 : vector<200x1xf32> to vector<200x13xf32>
    %21 = arith.subf %17, %20 : vector<200x13xf32>
    %22 = math.exp %21 : vector<200x13xf32>
    %cst_13 = arith.constant dense<0.000000e+00> : vector<200xf32>
    %23 = vector.multi_reduction <add>, %22, %cst_13 [1] : vector<200x13xf32> to vector<200xf32>
    %24 = vector.shape_cast %23 : vector<200xf32> to vector<200x1xf32>
    %25 = math.log %24 : vector<200x1xf32>
    %26 = vector.broadcast %25 : vector<200x1xf32> to vector<200x13xf32>
    %27 = arith.subf %21, %26 : vector<200x13xf32>
    %c0_14 = arith.constant 0 : index
    %c0_15 = arith.constant 0 : index
    %28 = vector.load %arg6[%c0_14, %c0_15] : memref<200x13xf32, #tpu.memory_space<vmem>>, vector<200x13xf32>
    tpu.vector_store %arg6[%c0_14, %c0_15], %27 {strides = array<i32>} : memref<200x13xf32, #tpu.memory_space<vmem>>, vector<200x13xf32>,
    return
  }
  func.func @transform_0(%arg0: i32) -> (i32, i32) {
    %c0_i32 = arith.constant 0 : i32
    %c0_i32_0 = arith.constant 0 : i32
    return %arg0, %c0_i32 : i32, i32
  }
  func.func @transform_1(%arg0: i32) -> (i32, i32) {
    %c0_i32 = arith.constant 0 : i32
    %c0_i32_0 = arith.constant 0 : i32
    %c0_i32_1 = arith.constant 0 : i32
    return %c0_i32, %c0_i32_0 : i32, i32
  }
  func.func @transform_2(%arg0: i32) -> (i32, i32) {
    %c0_i32 = arith.constant 0 : i32
    %c0_i32_0 = arith.constant 0 : i32
    %c0_i32_1 = arith.constant 0 : i32
    return %c0_i32, %c0_i32_0 : i32, i32
  }
  func.func @transform_3(%arg0: i32) -> (i32, i32) {
    %c0_i32 = arith.constant 0 : i32
    %c0_i32_0 = arith.constant 0 : i32
    %c0_i32_1 = arith.constant 0 : i32
    return %c0_i32, %c0_i32_0 : i32, i32
  }
  func.func @transform_4(%arg0: i32) -> (i32, i32) {
    %c0_i32 = arith.constant 0 : i32
    %c0_i32_0 = arith.constant 0 : i32
    %c0_i32_1 = arith.constant 0 : i32
    return %c0_i32, %c0_i32_0 : i32, i32
  }
  func.func @transform_5(%arg0: i32) -> (i32, i32) {
    %c0_i32 = arith.constant 0 : i32
    %c0_i32_0 = arith.constant 0 : i32
    return %arg0, %c0_i32 : i32, i32
  }
}

</mosaic_0001>

<bundles_post_ra>
// kernel: mlp_classifier_forward.1
= control target key start
LH: loop header
LB: loop body
LE: loop exit
PB: predicated region body
PF: predicated region fallthrough
CT: control target
= control target key end

     0   :  { %vm113_vm0 = vcmask 523264   ;;  %s1994_s1 = inlined_call_operand.vmem [shape: bf16[64,256], index: 1, kind: input, shape index: {}]   ;;  %s1995_s0 = inlined_call_operand.vmem [shape: f32[200,64], index: 0, kind: input, shape index: {}]   ;;  %s1996_s3 = inlined_call_operand.vmem [shape: bf16[256,13], index: 3, kind: input, shape index: {}]   ;;  %s1997_s2 = inlined_call_operand.vmem [shape: f32[1,256], index: 2, kind: input, shape index: {}]   ;;  %s1998_s4 = inlined_call_operand.vmem [shape: f32[1,13], index: 4, kind: input, shape index: {}]   ;;  %s1999_s5 = inlined_call_operand.vmem [shape: f32[200,13], index: 5, kind: output, shape index: {}]  }
   0x1   :  { %v1109_v0 = vld [vmem:[%s1994_s1 + $0x30] sm:$0xf]  ;;  %v1212_v1 = vld [vmem:[%s1994_s1 + $0x34] sm:$0xf0]  ;;  %v1211_v2 = vld [vmem:[%s1994_s1 + $0x34] sm:$0xf] }
   0x2   :  { %v1110_v3 = vor.u32 %v1212_v1, %v1109_v0  ;;  %v1111_v4 = vld [vmem:[%s1994_s1 + $0x38] sm:$0xf0]  ;;  %v1101_v5 = vld [vmem:[%s1994_s1 + $0x20] sm:$0xf]  ;;  %v1210_v6 = vld [vmem:[%s1994_s1 + $0x24] sm:$0xf0] }
   0x3   :  { %v1114_v7 = vor.u32 %v1211_v2, %v1111_v4  ;;  %v1209_v8 = vld [vmem:[%s1994_s1 + $0x24] sm:$0xf]  ;;  %v1103_v9 = vld [vmem:[%s1994_s1 + $0x28] sm:$0xf0]  ;;  %v1102_v10 = vor.u32 %v1210_v6, %v1101_v5  ;;  %v1093_v12 = vld [vmem:[%s1994_s1 + $0x10] sm:$0xf] }
   0x4   :  { %157 = vmatpush.bf16.msra.mxu0 %v1110_v3  ;;  %v1106_v11 = vor.u32 %v1209_v8, %v1103_v9  ;;  %v1208_v13 = vld [vmem:[%s1994_s1 + $0x14] sm:$0xf0]  ;;  %v1207_v14 = vld [vmem:[%s1994_s1 + $0x14] sm:$0xf]  ;;  %v1095_v15 = vld [vmem:[%s1994_s1 + $0x18] sm:$0xf0] }
   0x5   :  { %230 = vmatpush.bf16.msra.mxu1 %v1114_v7  ;;  %v1094_v16 = vor.u32 %v1208_v13, %v1093_v12  ;;  %v1098_v17 = vor.u32 %v1207_v14, %v1095_v15  ;;  %v1085_v18 = vld [vmem:[%s1994_s1] sm:$0xf]  ;;  %v1206_v19 = vld [vmem:[%s1994_s1 + $0x4] sm:$0xf0]  ;;  %v1205_v20 = vld [vmem:[%s1994_s1 + $0x4] sm:$0xf] }
   0x6   :  { %v1087_v21 = vld [vmem:[%s1994_s1 + $0x8] sm:$0xf0]  ;;  %v1086_v22 = vor.u32 %v1206_v19, %v1085_v18  ;;  %v21_v23 = vld [vmem:[%s1995_s0] sm:$0xff]  ;;  %v23_v27 = vld [vmem:[%s1995_s0 + $0x10] sm:$0xff] }
   0x7   :  { %v22_v24 = vld [vmem:[%s1995_s0 + $0x8] sm:$0xff]  ;;  %v1090_v25 = vor.u32 %v1205_v20, %v1087_v21  ;;  %v24_v28 = vld [vmem:[%s1995_s0 + $0x18] sm:$0xff]  ;;  %v25_v30 = vld [vmem:[%s1995_s0 + $0x20] sm:$0xff] }
   0x8   :  { %158 = vmatpush.bf16.msra.mxu0 %v1102_v10  ;;  %v46_v26 = vpack.c.bf16 %v22_v24, %v21_v23  ;;  %v47_v29 = vpack.c.bf16 %v24_v28, %v23_v27  ;;  %v26_v31 = vld [vmem:[%s1995_s0 + $0x28] sm:$0xff]  ;;  %v27_v33 = vld [vmem:[%s1995_s0 + $0x30] sm:$0xff]  ;;  %v28_v34 = vld [vmem:[%s1995_s0 + $0x38] sm:$0xff] }
   0x9   :  { %231 = vmatpush.bf16.msra.mxu1 %v1106_v11  ;;  %v48_v32 = vpack.c.bf16 %v26_v31, %v25_v30  ;;  %v49_v35 = vpack.c.bf16 %v28_v34, %v27_v33  ;;  %v29_v36 = vld [vmem:[%s1995_s0 + $0x40] sm:$0xff]  ;;  %v30_v37 = vld [vmem:[%s1995_s0 + $0x48] sm:$0xff]  ;;  %v1220_v39 = vld [vmem:[%s1996_s3 + $0x38] sm:$0xff] }
   0xa   :  { %v50_v38 = vpack.c.bf16 %v30_v37, %v29_v36  ;;  %v1228_v40 = vld [vmem:[%s1996_s3 + $0x78] sm:$0xff]  ;;  %607 = vmatpush.bf16.msra.mxu2 %v1220_v39  ;;  %v31_v41 = vld [vmem:[%s1995_s0 + $0x50] sm:$0xff]  ;;  %v1218_v46 = vld [vmem:[%s1996_s3 + $0x28] sm:$0xff] }
   0xb   :  { %680 = vmatpush.bf16.msra.mxu3 %v1228_v40  ;;  %v32_v42 = vld [vmem:[%s1995_s0 + $0x58] sm:$0xff]  ;;  %v1219_v44 = vld [vmem:[%s1996_s3 + $0x30] sm:$0xff]  ;;  %v1226_v47 = vld [vmem:[%s1996_s3 + $0x68] sm:$0xff] }
   0xc   :  { %159 = vmatpush.bf16.msra.mxu0 %v1094_v16  ;;  %v51_v43 = vpack.c.bf16 %v32_v42, %v31_v41  ;;  %v1227_v45 = vld [vmem:[%s1996_s3 + $0x70] sm:$0xff]  ;;  %v1217_v48 = vld [vmem:[%s1996_s3 + $0x20] sm:$0xff]  ;;  %v34_v51 = vld [vmem:[%s1995_s0 + $0x68] sm:$0xff] }
   0xd   :  { %232 = vmatpush.bf16.msra.mxu1 %v1098_v17  ;;  %v1225_v49 = vld [vmem:[%s1996_s3 + $0x60] sm:$0xff]  ;;  %v1216_v53 = vld [vmem:[%s1996_s3 + $0x18] sm:$0xff]  ;;  %v1215_v55 = vld [vmem:[%s1996_s3 + $0x10] sm:$0xff] }
   0xe   :  { %608 = vmatpush.bf16.msra.mxu2 %v1219_v44  ;;  %v33_v50 = vld [vmem:[%s1995_s0 + $0x60] sm:$0xff]  ;;  %v1224_v54 = vld [vmem:[%s1996_s3 + $0x58] sm:$0xff]  ;;  %v1223_v56 = vld [vmem:[%s1996_s3 + $0x50] sm:$0xff] }
   0xf   :  { %681 = vmatpush.bf16.msra.mxu3 %v1227_v45  ;;  %v52_v52 = vpack.c.bf16 %v34_v51, %v33_v50  ;;  %v1214_v57 = vld [vmem:[%s1996_s3 + $0x8] sm:$0xff]  ;;  %v35_v59 = vld [vmem:[%s1995_s0 + $0x70] sm:$0xff]  ;;  %v36_v60 = vld [vmem:[%s1995_s0 + $0x78] sm:$0xff] }
  0x10   :  { %160 = vmatpush.bf16.msra.mxu0 %v1086_v22  ;;  %v1222_v58 = vld [vmem:[%s1996_s3 + $0x48] sm:$0xff]  ;;  %v1213_v61 = vld [vmem:[%s1996_s3] sm:$0xff]  ;;  %v53_v63 = vpack.c.bf16 %v36_v60, %v35_v59  ;;  %v39_v18 = vld [vmem:[%s1995_s0 + $0x90] sm:$0xff] }
  0x11   :  { %233 = vmatpush.bf16.msra.mxu1 %v1090_v25  ;;  %v1221_v62 = vld [vmem:[%s1996_s3 + $0x40] sm:$0xff]  ;;  %v38_v1 = vld [vmem:[%s1995_s0 + $0x88] sm:$0xff]  ;;  %v40_v19 = vld [vmem:[%s1995_s0 + $0x98] sm:$0xff] }
  0x12   :  { %609 = vmatpush.bf16.msra.mxu2 %v1218_v46  ;;  %v37_v0 = vld [vmem:[%s1995_s0 + $0x80] sm:$0xff]  ;;  %v42_v40 = vld [vmem:[%s1995_s0 + $0xa8] sm:$0xff]  ;;  %v43_v60 = vld [vmem:[%s1995_s0 + $0xb0] sm:$0xff] }
  0x13   :  { %1115 = vmatmul.msk.bf16.vlgmr.msra.gmra.mxu0 %vm113_vm0, %v46_v26  ;;  %682 = vmatpush.bf16.msra.mxu3 %v1226_v47  ;;  %v67_v2 = vld [vmem:[%s1997_s2] sm:$0x3]  ;;  %v54_v3 = vpack.c.bf16 %v38_v1, %v37_v0 }
  0x14   :  { %1128 = vmatmul.msk.bf16.vlgmr.msra.gmra.mxu1 %vm113_vm0, %v46_v26  ;;  %v1529_v5 = vperm.slane %v67_v2, 0  ;;  %v1531_v7 = vperm.slane %v67_v2, 1  ;;  %v55_v26 = vpack.c.bf16 %v40_v19, %v39_v18  ;;  %v41_v39 = vld [vmem:[%s1995_s0 + $0xa0] sm:$0xff] }
  0x15   :  { %v56_v47 = vpack.c.bf16 %v42_v40, %v41_v39  ;;  %v45_v19 = vld [vmem:[%s1995_s0 + $0xc0] sm:$0xff] }
  0x16   :  { %610 = vmatpush.bf16.msra.mxu2 %v1217_v48 }
  0x17   :  { %683 = vmatpush.bf16.msra.mxu3 %v1225_v49 }
  0x1a   :  { %611 = vmatpush.bf16.msra.mxu2 %v1216_v53 }
  0x1b   :  { %684 = vmatpush.bf16.msra.mxu3 %v1224_v54 }
  0x1e   :  { %612 = vmatpush.bf16.msra.mxu2 %v1215_v55 }
  0x1f   :  { %685 = vmatpush.bf16.msra.mxu3 %v1223_v56 }
  0x22   :  { %613 = vmatpush.bf16.msra.mxu2 %v1214_v57 }
  0x23   :  { %1116 = vmatmul.msk.bf16.gmra.mxu0 %vm113_vm0, %v47_v29  ;;  %686 = vmatpush.bf16.msra.mxu3 %v1222_v58 }
  0x24   :  { %1129 = vmatmul.msk.bf16.gmra.mxu1 %vm113_vm0, %v47_v29 }
  0x26   :  { %614 = vmatpush.bf16.msra.mxu2 %v1213_v61  ;;  %v44_v61 = vld [vmem:[%s1995_s0 + $0xb8] sm:$0xff] }
  0x27   :  { %687 = vmatpush.bf16.msra.mxu3 %v1221_v62 }
  0x33   :  { %1117 = vmatmul.msk.bf16.gmra.mxu0 %vm113_vm0, %v48_v32 }
  0x34   :  { %1130 = vmatmul.msk.bf16.gmra.mxu1 %vm113_vm0, %v48_v32 }
  0x43   :  { %1118 = vmatmul.msk.bf16.gmra.mxu0 %vm113_vm0, %v49_v35 }
  0x44   :  { %1131 = vmatmul.msk.bf16.gmra.mxu1 %vm113_vm0, %v49_v35 }
  0x53   :  { %1119 = vmatmul.msk.bf16.gmra.mxu0 %vm113_vm0, %v50_v38 }
  0x54   :  { %1132 = vmatmul.msk.bf16.gmra.mxu1 %vm113_vm0, %v50_v38 }
  0x63   :  { %1120 = vmatmul.msk.bf16.gmra.mxu0 %vm113_vm0, %v51_v43 }
  0x64   :  { %1133 = vmatmul.msk.bf16.gmra.mxu1 %vm113_vm0, %v51_v43 }
  0x73   :  { %1121 = vmatmul.msk.bf16.gmra.mxu0 %vm113_vm0, %v52_v52 }
  0x74   :  { %1134 = vmatmul.msk.bf16.gmra.mxu1 %vm113_vm0, %v52_v52 }
  0x83   :  { %1122 = vmatmul.msk.bf16.gmra.mxu0 %vm113_vm0, %v53_v63 }
  0x84   :  { %1135 = vmatmul.msk.bf16.gmra.mxu1 %vm113_vm0, %v53_v63 }
  0x90   :  { %v162_v4 = vpop.f32.mrf.mxu0 }
  0x91   :  { %v235_v6 = vpop.f32.mrf.mxu1  ;;  %v163_v8 = vadd.f32 %v162_v4, %v1529_v5  ;;  %v57_v4 = vpack.c.bf16 %v44_v61, %v43_v60 }
  0x92   :  { %v236_v9 = vadd.f32 %v235_v6, %v1531_v7 }
  0x93   :  { %1123 = vmatmul.msk.bf16.gmra.mxu0 %vm113_vm0, %v54_v3  ;;  %v349_v11 = vmul.f32 0.2, %v163_v8  ;;  %vm299_vm1 = vcmp.ge.f32.partialorder %v163_v8, 0.0 }
  0x94   :  { %1136 = vmatmul.msk.bf16.gmra.mxu1 %vm113_vm0, %v54_v3  ;;  %v350_v14 = vmul.f32 0.2, %v236_v9  ;;  %vm300_vm3 = vcmp.ge.f32.partialorder %v236_v9, 0.0 }
  0x95   :  { %v399_v20 = vsel %vm299_vm1, %v163_v8, %v349_v11 }
  0x96   :  { %v400_v23 = vsel %vm300_vm3, %v236_v9, %v350_v14 }
  0x98   :  { %v164_v10 = vpop.f32.mrf.mxu0 }
  0x99   :  { %v165_v12 = vadd.f32 %v164_v10, %v1529_v5  ;;  %v237_v13 = vpop.f32.mrf.mxu1 }
  0x9a   :  { %v238_v15 = vadd.f32 %v237_v13, %v1531_v7 }
  0x9b   :  { %v351_v16 = vmul.f32 0.2, %v165_v12  ;;  %vm301_vm2 = vcmp.ge.f32.partialorder %v165_v12, 0.0 }
  0x9c   :  { %v352_v17 = vmul.f32 0.2, %v238_v15  ;;  %vm302_vm4 = vcmp.ge.f32.partialorder %v238_v15, 0.0 }
  0x9d   :  { %v401_v21 = vsel %vm301_vm2, %v165_v12, %v351_v16 }
  0x9e   :  { %v449_v22 = vpack.c.bf16 %v401_v21, %v399_v20  ;;  %v402_v24 = vsel %vm302_vm4, %v238_v15, %v352_v17 }
  0x9f   :  { %v450_v25 = vpack.c.bf16 %v402_v24, %v400_v23 }
  0xa0   :  { %v167_v27 = vpop.f32.mrf.mxu0  ;;  %615 = vmatmul.bf16.vlgmr.msra.gmra.mxu2 %v449_v22 }
  0xa1   :  { %v240_v28 = vpop.f32.mrf.mxu1  ;;  %688 = vmatmul.bf16.vlgmr.msra.gmra.mxu3 %v450_v25  ;;  %v168_v29 = vadd.f32 %v167_v27, %v1529_v5 }
  0xa2   :  { %v241_v30 = vadd.f32 %v240_v28, %v1531_v7 }
  0xa3   :  { %1124 = vmatmul.msk.bf16.gmra.mxu0 %vm113_vm0, %v55_v26  ;;  %v353_v32 = vmul.f32 0.2, %v168_v29  ;;  %vm303_vm5 = vcmp.ge.f32.partialorder %v168_v29, 0.0 }
  0xa4   :  { %1137 = vmatmul.msk.bf16.gmra.mxu1 %vm113_vm0, %v55_v26  ;;  %v354_v35 = vmul.f32 0.2, %v241_v30  ;;  %vm304_vm7 = vcmp.ge.f32.partialorder %v241_v30, 0.0  ;;  %v58_v26 = vpack.c.bf16 %v45_v19, %v45_v19 }
  0xa5   :  { %v403_v41 = vsel %vm303_vm5, %v168_v29, %v353_v32 }
  0xa6   :  { %v404_v44 = vsel %vm304_vm7, %v241_v30, %v354_v35 }
  0xa8   :  { %v169_v31 = vpop.f32.mrf.mxu0 }
  0xa9   :  { %v170_v33 = vadd.f32 %v169_v31, %v1529_v5  ;;  %v242_v34 = vpop.f32.mrf.mxu1 }
  0xaa   :  { %v243_v36 = vadd.f32 %v242_v34, %v1531_v7 }
  0xab   :  { %v355_v37 = vmul.f32 0.2, %v170_v33  ;;  %vm305_vm6 = vcmp.ge.f32.partialorder %v170_v33, 0.0 }
  0xac   :  { %v356_v38 = vmul.f32 0.2, %v243_v36  ;;  %vm306_vm8 = vcmp.ge.f32.partialorder %v243_v36, 0.0 }
  0xad   :  { %v405_v42 = vsel %vm305_vm6, %v170_v33, %v355_v37 }
  0xae   :  { %v451_v43 = vpack.c.bf16 %v405_v42, %v403_v41  ;;  %v406_v45 = vsel %vm306_vm8, %v243_v36, %v356_v38 }
  0xaf   :  { %v452_v46 = vpack.c.bf16 %v406_v45, %v404_v44 }
  0xb0   :  { %v172_v48 = vpop.f32.mrf.mxu0  ;;  %620 = vmatmul.bf16.gmra.mxu2 %v451_v43 }
  0xb1   :  { %v245_v49 = vpop.f32.mrf.mxu1  ;;  %693 = vmatmul.bf16.gmra.mxu3 %v452_v46  ;;  %v173_v50 = vadd.f32 %v172_v48, %v1529_v5 }
  0xb2   :  { %v246_v51 = vadd.f32 %v245_v49, %v1531_v7 }
  0xb3   :  { %1125 = vmatmul.msk.bf16.gmra.mxu0 %vm113_vm0, %v56_v47  ;;  %v357_v53 = vmul.f32 0.2, %v173_v50  ;;  %vm307_vm9 = vcmp.ge.f32.partialorder %v173_v50, 0.0 }
  0xb4   :  { %1138 = vmatmul.msk.bf16.gmra.mxu1 %vm113_vm0, %v56_v47  ;;  %v358_v56 = vmul.f32 0.2, %v246_v51  ;;  %vm308_vm11 = vcmp.ge.f32.partialorder %v246_v51, 0.0 }
  0xb5   :  { %v407_v62 = vsel %vm307_vm9, %v173_v50, %v357_v53 }
  0xb6   :  { %v408_v1 = vsel %vm308_vm11, %v246_v51, %v358_v56 }
  0xb8   :  { %v174_v52 = vpop.f32.mrf.mxu0 }
  0xb9   :  { %v175_v54 = vadd.f32 %v174_v52, %v1529_v5  ;;  %v247_v55 = vpop.f32.mrf.mxu1 }
  0xba   :  { %v248_v57 = vadd.f32 %v247_v55, %v1531_v7 }
  0xbb   :  { %v359_v58 = vmul.f32 0.2, %v175_v54  ;;  %vm309_vm10 = vcmp.ge.f32.partialorder %v175_v54, 0.0 }
  0xbc   :  { %v360_v59 = vmul.f32 0.2, %v248_v57  ;;  %vm310_vm12 = vcmp.ge.f32.partialorder %v248_v57, 0.0 }
  0xbd   :  { %v409_v63 = vsel %vm309_vm10, %v175_v54, %v359_v58 }
  0xbe   :  { %v453_v0 = vpack.c.bf16 %v409_v63, %v407_v62  ;;  %v410_v2 = vsel %vm310_vm12, %v248_v57, %v360_v59 }
  0xbf   :  { %v454_v3 = vpack.c.bf16 %v410_v2, %v408_v1 }
  0xc0   :  { %v177_v6 = vpop.f32.mrf.mxu0  ;;  %625 = vmatmul.bf16.gmra.mxu2 %v453_v0 }
  0xc1   :  { %v250_v8 = vpop.f32.mrf.mxu1  ;;  %698 = vmatmul.bf16.gmra.mxu3 %v454_v3  ;;  %v178_v9 = vadd.f32 %v177_v6, %v1529_v5 }
  0xc2   :  { %v251_v10 = vadd.f32 %v250_v8, %v1531_v7 }
  0xc3   :  { %1126 = vmatmul.msk.bf16.gmra.mxu0 %vm113_vm0, %v57_v4  ;;  %v361_v12 = vmul.f32 0.2, %v178_v9  ;;  %vm311_vm13 = vcmp.ge.f32.partialorder %v178_v9, 0.0 }
  0xc4   :  { %1139 = vmatmul.msk.bf16.gmra.mxu1 %vm113_vm0, %v57_v4  ;;  %v362_v15 = vmul.f32 0.2, %v251_v10  ;;  %vm312_vm15 = vcmp.ge.f32.partialorder %v251_v10, 0.0 }
  0xc5   :  { %v411_v20 = vsel %vm311_vm13, %v178_v9, %v361_v12 }
  0xc6   :  { %v412_v23 = vsel %vm312_vm15, %v251_v10, %v362_v15 }
  0xc8   :  { %v179_v11 = vpop.f32.mrf.mxu0 }
  0xc9   :  { %v180_v13 = vadd.f32 %v179_v11, %v1529_v5  ;;  %v252_v14 = vpop.f32.mrf.mxu1 }
  0xca   :  { %v253_v16 = vadd.f32 %v252_v14, %v1531_v7 }
  0xcb   :  { %v363_v17 = vmul.f32 0.2, %v180_v13  ;;  %vm313_vm14 = vcmp.ge.f32.partialorder %v180_v13, 0.0 }
  0xcc   :  { %v364_v18 = vmul.f32 0.2, %v253_v16  ;;  %vm314_vm1 = vcmp.ge.f32.partialorder %v253_v16, 0.0 }
  0xcd   :  { %v413_v21 = vsel %vm313_vm14, %v180_v13, %v363_v17 }
  0xce   :  { %v455_v22 = vpack.c.bf16 %v413_v21, %v411_v20  ;;  %v414_v24 = vsel %vm314_vm1, %v253_v16, %v364_v18 }
  0xcf   :  { %v456_v25 = vpack.c.bf16 %v414_v24, %v412_v23 }
  0xd0   :  { %v182_v27 = vpop.f32.mrf.mxu0  ;;  %630 = vmatmul.bf16.gmra.mxu2 %v455_v22 }
  0xd1   :  { %v255_v28 = vpop.f32.mrf.mxu1  ;;  %703 = vmatmul.bf16.gmra.mxu3 %v456_v25  ;;  %v183_v29 = vadd.f32 %v182_v27, %v1529_v5 }
  0xd2   :  { %v256_v30 = vadd.f32 %v255_v28, %v1531_v7 }
  0xd3   :  { %1127 = vmatmul.msk.bf16.gmra.mxu0 %vm113_vm0, %v58_v26  ;;  %v365_v32 = vmul.f32 0.2, %v183_v29  ;;  %vm315_vm2 = vcmp.ge.f32.partialorder %v183_v29, 0.0 }
  0xd4   :  { %1140 = vmatmul.msk.bf16.gmra.mxu1 %vm113_vm0, %v58_v26  ;;  %v366_v35 = vmul.f32 0.2, %v256_v30  ;;  %vm316_vm4 = vcmp.ge.f32.partialorder %v256_v30, 0.0 }
  0xd5   :  { %v415_v39 = vsel %vm315_vm2, %v183_v29, %v365_v32 }
  0xd6   :  { %v416_v42 = vsel %vm316_vm4, %v256_v30, %v366_v35 }
  0xd8   :  { %v184_v31 = vpop.f32.mrf.mxu0 }
  0xd9   :  { %v185_v33 = vadd.f32 %v184_v31, %v1529_v5  ;;  %v257_v34 = vpop.f32.mrf.mxu1 }
  0xda   :  { %v258_v36 = vadd.f32 %v257_v34, %v1531_v7 }
  0xdb   :  { %v367_v37 = vmul.f32 0.2, %v185_v33  ;;  %vm317_vm3 = vcmp.ge.f32.partialorder %v185_v33, 0.0 }
  0xdc   :  { %v368_v38 = vmul.f32 0.2, %v258_v36  ;;  %vm318_vm5 = vcmp.ge.f32.partialorder %v258_v36, 0.0 }
  0xdd   :  { %v417_v40 = vsel %vm317_vm3, %v185_v33, %v367_v37 }
  0xde   :  { %v457_v41 = vpack.c.bf16 %v417_v40, %v415_v39  ;;  %v418_v43 = vsel %vm318_vm5, %v258_v36, %v368_v38 }
  0xdf   :  { %v458_v44 = vpack.c.bf16 %v418_v43, %v416_v42 }
  0xe0   :  { %v187_v45 = vpop.f32.mrf.mxu0  ;;  %635 = vmatmul.bf16.gmra.mxu2 %v457_v41 }
  0xe1   :  { %v260_v46 = vpop.f32.mrf.mxu1  ;;  %708 = vmatmul.bf16.gmra.mxu3 %v458_v44  ;;  %v188_v47 = vadd.f32 %v187_v45, %v1529_v5 }
  0xe2   :  { %v261_v48 = vadd.f32 %v260_v46, %v1531_v7 }
  0xe3   :  { %v369_v50 = vmul.f32 0.2, %v188_v47  ;;  %vm319_vm0 = vcmp.ge.f32.partialorder %v188_v47, 0.0 }
  0xe4   :  { %v370_v53 = vmul.f32 0.2, %v261_v48  ;;  %vm320_vm7 = vcmp.ge.f32.partialorder %v261_v48, 0.0 }
  0xe5   :  { %v419_v57 = vsel %vm319_vm0, %v188_v47, %v369_v50  ;;  %vm753_vm0 = vcmask 105472  }
  0xe6   :  { %v420_v60 = vsel %vm320_vm7, %v261_v48, %v370_v53 }
  0xe8   :  { %v189_v49 = vpop.f32.mrf.mxu0 }
  0xe9   :  { %v190_v51 = vadd.f32 %v189_v49, %v1529_v5  ;;  %v262_v52 = vpop.f32.mrf.mxu1 }
  0xea   :  { %v263_v54 = vadd.f32 %v262_v52, %v1531_v7 }
  0xeb   :  { %v371_v55 = vmul.f32 0.2, %v190_v51  ;;  %vm321_vm6 = vcmp.ge.f32.partialorder %v190_v51, 0.0 }
  0xec   :  { %v372_v56 = vmul.f32 0.2, %v263_v54  ;;  %vm322_vm8 = vcmp.ge.f32.partialorder %v263_v54, 0.0 }
  0xed   :  { %v421_v58 = vsel %vm321_vm6, %v190_v51, %v371_v55 }
  0xee   :  { %v459_v59 = vpack.c.bf16 %v421_v58, %v419_v57  ;;  %v422_v61 = vsel %vm322_vm8, %v263_v54, %v372_v56  ;;  %v1603_v56 = vld [vmem:[%s1998_s4] ss:$0 sm:$0xff] }
  0xef   :  { %v460_v62 = vpack.c.bf16 %v422_v61, %v420_v60 }
  0xf0   :  { %v192_v63 = vpop.f32.mrf.mxu0  ;;  %640 = vmatmul.bf16.gmra.mxu2 %v459_v59 }
  0xf1   :  { %v265_v0 = vpop.f32.mrf.mxu1  ;;  %713 = vmatmul.bf16.gmra.mxu3 %v460_v62  ;;  %v193_v1 = vadd.f32 %v192_v63, %v1529_v5 }
  0xf2   :  { %v266_v2 = vadd.f32 %v265_v0, %v1531_v7 }
  0xf3   :  { %v373_v4 = vmul.f32 0.2, %v193_v1  ;;  %vm323_vm9 = vcmp.ge.f32.partialorder %v193_v1, 0.0 }
  0xf4   :  { %v374_v9 = vmul.f32 0.2, %v266_v2  ;;  %vm324_vm11 = vcmp.ge.f32.partialorder %v266_v2, 0.0 }
  0xf5   :  { %v423_v13 = vsel %vm323_vm9, %v193_v1, %v373_v4 }
  0xf6   :  { %v424_v16 = vsel %vm324_vm11, %v266_v2, %v374_v9 }
  0xf8   :  { %v194_v3 = vpop.f32.mrf.mxu0 }
  0xf9   :  { %v195_v6 = vadd.f32 %v194_v3, %v1529_v5  ;;  %v267_v8 = vpop.f32.mrf.mxu1 }
  0xfa   :  { %v268_v10 = vadd.f32 %v267_v8, %v1531_v7 }
  0xfb   :  { %v375_v11 = vmul.f32 0.2, %v195_v6  ;;  %vm325_vm10 = vcmp.ge.f32.partialorder %v195_v6, 0.0 }
  0xfc   :  { %v376_v12 = vmul.f32 0.2, %v268_v10  ;;  %vm326_vm12 = vcmp.ge.f32.partialorder %v268_v10, 0.0 }
  0xfd   :  { %v425_v14 = vsel %vm325_vm10, %v195_v6, %v375_v11 }
  0xfe   :  { %v461_v15 = vpack.c.bf16 %v425_v14, %v423_v13  ;;  %v426_v17 = vsel %vm326_vm12, %v268_v10, %v376_v12 }
  0xff   :  { %v462_v18 = vpack.c.bf16 %v426_v17, %v424_v16 }
 0x100   :  { %v197_v19 = vpop.f32.mrf.mxu0  ;;  %645 = vmatmul.bf16.gmra.mxu2 %v461_v15 }
 0x101   :  { %v270_v20 = vpop.f32.mrf.mxu1  ;;  %718 = vmatmul.bf16.gmra.mxu3 %v462_v18  ;;  %v198_v21 = vadd.f32 %v197_v19, %v1529_v5 }
 0x102   :  { %v271_v22 = vadd.f32 %v270_v20, %v1531_v7 }
 0x103   :  { %v377_v24 = vmul.f32 0.2, %v198_v21  ;;  %vm327_vm13 = vcmp.ge.f32.partialorder %v198_v21, 0.0 }
 0x104   :  { %v378_v27 = vmul.f32 0.2, %v271_v22  ;;  %vm328_vm15 = vcmp.ge.f32.partialorder %v271_v22, 0.0 }
 0x105   :  { %v427_v31 = vsel %vm327_vm13, %v198_v21, %v377_v24 }
 0x106   :  { %v428_v34 = vsel %vm328_vm15, %v271_v22, %v378_v27 }
 0x108   :  { %v199_v23 = vpop.f32.mrf.mxu0 }
 0x109   :  { %v200_v25 = vadd.f32 %v199_v23, %v1529_v5  ;;  %v272_v26 = vpop.f32.mrf.mxu1 }
 0x10a   :  { %v273_v28 = vadd.f32 %v272_v26, %v1531_v7 }
 0x10b   :  { %v379_v29 = vmul.f32 0.2, %v200_v25  ;;  %vm329_vm14 = vcmp.ge.f32.partialorder %v200_v25, 0.0 }
 0x10c   :  { %v380_v30 = vmul.f32 0.2, %v273_v28  ;;  %vm330_vm1 = vcmp.ge.f32.partialorder %v273_v28, 0.0 }
 0x10d   :  { %v429_v32 = vsel %vm329_vm14, %v200_v25, %v379_v29 }
 0x10e   :  { %v463_v33 = vpack.c.bf16 %v429_v32, %v427_v31  ;;  %v430_v35 = vsel %vm330_vm1, %v273_v28, %v380_v30 }
 0x10f   :  { %v464_v36 = vpack.c.bf16 %v430_v35, %v428_v34 }
 0x110   :  { %v202_v37 = vpop.f32.mrf.mxu0  ;;  %650 = vmatmul.bf16.gmra.mxu2 %v463_v33 }
 0x111   :  { %v275_v38 = vpop.f32.mrf.mxu1  ;;  %723 = vmatmul.bf16.gmra.mxu3 %v464_v36  ;;  %v203_v39 = vadd.f32 %v202_v37, %v1529_v5 }
 0x112   :  { %v276_v40 = vadd.f32 %v275_v38, %v1531_v7 }
 0x113   :  { %v381_v42 = vmul.f32 0.2, %v203_v39  ;;  %vm331_vm2 = vcmp.ge.f32.partialorder %v203_v39, 0.0 }
 0x114   :  { %v382_v45 = vmul.f32 0.2, %v276_v40  ;;  %vm332_vm4 = vcmp.ge.f32.partialorder %v276_v40, 0.0 }
 0x115   :  { %v431_v49 = vsel %vm331_vm2, %v203_v39, %v381_v42 }
 0x116   :  { %v432_v52 = vsel %vm332_vm4, %v276_v40, %v382_v45 }
 0x118   :  { %v204_v41 = vpop.f32.mrf.mxu0 }
 0x119   :  { %v205_v43 = vadd.f32 %v204_v41, %v1529_v5  ;;  %v277_v44 = vpop.f32.mrf.mxu1 }
 0x11a   :  { %v278_v46 = vadd.f32 %v277_v44, %v1531_v7 }
 0x11b   :  { %v383_v47 = vmul.f32 0.2, %v205_v43  ;;  %vm333_vm3 = vcmp.ge.f32.partialorder %v205_v43, 0.0 }
 0x11c   :  { %v384_v48 = vmul.f32 0.2, %v278_v46  ;;  %vm334_vm5 = vcmp.ge.f32.partialorder %v278_v46, 0.0 }
 0x11d   :  { %v433_v50 = vsel %vm333_vm3, %v205_v43, %v383_v47 }
 0x11e   :  { %v465_v51 = vpack.c.bf16 %v433_v50, %v431_v49  ;;  %v434_v53 = vsel %vm334_vm5, %v278_v46, %v384_v48 }
 0x11f   :  { %v466_v54 = vpack.c.bf16 %v434_v53, %v432_v52 }
 0x120   :  { %v207_v55 = vpop.f32.mrf.mxu0  ;;  %655 = vmatmul.bf16.gmra.mxu2 %v465_v51 }
 0x121   :  { %v280_v57 = vpop.f32.mrf.mxu1  ;;  %728 = vmatmul.bf16.gmra.mxu3 %v466_v54  ;;  %v208_v61 = vadd.f32 %v207_v55, %v1529_v5 }
 0x122   :  { %v281_v62 = vadd.f32 %v280_v57, %v1531_v7 }
 0x123   :  { %v616_v58 = vpop.f32.mrf.mxu2  ;;  %v385_v2 = vmul.f32 0.2, %v208_v61  ;;  %vm335_vm6 = vcmp.ge.f32.partialorder %v208_v61, 0.0 }
 0x124   :  { %v617_v59 = vadd.f32 %v1603_v56, %v616_v58  ;;  %v689_v60 = vpop.f32.mrf.mxu3  ;;  %v386_v6 = vmul.f32 0.2, %v281_v62  ;;  %vm336_vm8 = vcmp.ge.f32.partialorder %v281_v62, 0.0 }
 0x125   :  { %v435_v14 = vsel %vm335_vm6, %v208_v61, %v385_v2 }
 0x126   :  { %v1608_v63 = vadd.f32 %v689_v60, %v617_v59  ;;  %v436_v18 = vsel %vm336_vm8, %v281_v62, %v386_v6 }
 0x128   :  { %v209_v0 = vpop.f32.mrf.mxu0  ;;  %v754_v1 = vsel %vm753_vm0, %v1608_v63, -inf }
 0x129   :  { %v210_v3 = vadd.f32 %v209_v0, %v1529_v5  ;;  %v282_v4 = vpop.f32.mrf.mxu1  ;;  %755 = vmax.xlane.f32.xlu0 %v754_v1 }
 0x12a   :  { %v283_v8 = vadd.f32 %v282_v4, %v1531_v7 }
 0x12b   :  { %v387_v9 = vmul.f32 0.2, %v210_v3  ;;  %v618_v10 = vpop.f32.mrf.mxu2  ;;  %vm337_vm7 = vcmp.ge.f32.partialorder %v210_v3, 0.0 }
 0x12c   :  { %v388_v11 = vmul.f32 0.2, %v283_v8  ;;  %v619_v12 = vadd.f32 %v1603_v56, %v618_v10  ;;  %v691_v13 = vpop.f32.mrf.mxu3  ;;  %vm338_vm9 = vcmp.ge.f32.partialorder %v283_v8, 0.0 }
 0x12d   :  { %v437_v15 = vsel %vm337_vm7, %v210_v3, %v387_v9 }
 0x12e   :  { %v1615_v16 = vadd.f32 %v691_v13, %v619_v12  ;;  %v467_v17 = vpack.c.bf16 %v437_v15, %v435_v14  ;;  %v438_v19 = vsel %vm338_vm9, %v283_v8, %v388_v11 }
 0x12f   :  { %v468_v20 = vpack.c.bf16 %v438_v19, %v436_v18 }
 0x130   :  { %v212_v21 = vpop.f32.mrf.mxu0  ;;  %660 = vmatmul.bf16.gmra.mxu2 %v467_v17  ;;  %v757_v22 = vsel %vm753_vm0, %v1615_v16, -inf }
 0x131   :  { %v285_v23 = vpop.f32.mrf.mxu1  ;;  %733 = vmatmul.bf16.gmra.mxu3 %v468_v20  ;;  %758 = vmax.xlane.f32.xlu0 %v757_v22  ;;  %v213_v27 = vadd.f32 %v212_v21, %v1529_v5 }
 0x132   :  { %v286_v28 = vadd.f32 %v285_v23, %v1531_v7 }
 0x133   :  { %v621_v24 = vpop.f32.mrf.mxu2  ;;  %v389_v32 = vmul.f32 0.2, %v213_v27  ;;  %vm339_vm10 = vcmp.ge.f32.partialorder %v213_v27, 0.0 }
 0x134   :  { %v622_v25 = vadd.f32 %v1603_v56, %v621_v24  ;;  %v694_v26 = vpop.f32.mrf.mxu3  ;;  %v390_v35 = vmul.f32 0.2, %v286_v28  ;;  %vm340_vm12 = vcmp.ge.f32.partialorder %v286_v28, 0.0 }
 0x135   :  { %v439_v42 = vsel %vm339_vm10, %v213_v27, %v389_v32 }
 0x136   :  { %v1622_v29 = vadd.f32 %v694_v26, %v622_v25  ;;  %v440_v46 = vsel %vm340_vm12, %v286_v28, %v390_v35 }
 0x138   :  { %v214_v30 = vpop.f32.mrf.mxu0  ;;  %v760_v31 = vsel %vm753_vm0, %v1622_v29, -inf }
 0x139   :  { %v215_v33 = vadd.f32 %v214_v30, %v1529_v5  ;;  %v287_v34 = vpop.f32.mrf.mxu1  ;;  %761 = vmax.xlane.f32.xlu1 %v760_v31 }
 0x13a   :  { %v288_v36 = vadd.f32 %v287_v34, %v1531_v7 }
 0x13b   :  { %v391_v37 = vmul.f32 0.2, %v215_v33  ;;  %v623_v38 = vpop.f32.mrf.mxu2  ;;  %vm341_vm11 = vcmp.ge.f32.partialorder %v215_v33, 0.0 }
 0x13c   :  { %v392_v39 = vmul.f32 0.2, %v288_v36  ;;  %v624_v40 = vadd.f32 %v1603_v56, %v623_v38  ;;  %v696_v41 = vpop.f32.mrf.mxu3  ;;  %vm342_vm13 = vcmp.ge.f32.partialorder %v288_v36, 0.0 }
 0x13d   :  { %v441_v43 = vsel %vm341_vm11, %v215_v33, %v391_v37 }
 0x13e   :  { %v1629_v44 = vadd.f32 %v696_v41, %v624_v40  ;;  %v469_v45 = vpack.c.bf16 %v441_v43, %v439_v42  ;;  %v442_v47 = vsel %vm342_vm13, %v288_v36, %v392_v39 }
 0x13f   :  { %v470_v48 = vpack.c.bf16 %v442_v47, %v440_v46 }
 0x140   :  { %v217_v49 = vpop.f32.mrf.mxu0  ;;  %665 = vmatmul.bf16.gmra.mxu2 %v469_v45  ;;  %v763_v50 = vsel %vm753_vm0, %v1629_v44, -inf }
 0x141   :  { %v290_v51 = vpop.f32.mrf.mxu1  ;;  %738 = vmatmul.bf16.gmra.mxu3 %v470_v48  ;;  %764 = vmax.xlane.f32.xlu1 %v763_v50  ;;  %v218_v55 = vadd.f32 %v217_v49, %v1529_v5 }
 0x142   :  { %v291_v57 = vadd.f32 %v290_v51, %v1531_v7 }
 0x143   :  { %v626_v52 = vpop.f32.mrf.mxu2  ;;  %v393_v61 = vmul.f32 0.2, %v218_v55  ;;  %vm343_vm14 = vcmp.ge.f32.partialorder %v218_v55, 0.0 }
 0x144   :  { %v627_v53 = vadd.f32 %v1603_v56, %v626_v52  ;;  %v699_v54 = vpop.f32.mrf.mxu3  ;;  %v394_v1 = vmul.f32 0.2, %v291_v57  ;;  %vm344_vm1 = vcmp.ge.f32.partialorder %v291_v57, 0.0 }
 0x145   :  { %v443_v10 = vsel %vm343_vm14, %v218_v55, %v393_v61 }
 0x146   :  { %v1636_v58 = vadd.f32 %v699_v54, %v627_v53  ;;  %v444_v14 = vsel %vm344_vm1, %v291_v57, %v394_v1 }
 0x148   :  { %v219_v59 = vpop.f32.mrf.mxu0  ;;  %v766_v60 = vsel %vm753_vm0, %v1636_v58, -inf }
 0x149   :  { %v220_v62 = vadd.f32 %v219_v59, %v1529_v5  ;;  %v292_v0 = vpop.f32.mrf.mxu1  ;;  %767 = vmax.xlane.f32.xlu2 %v766_v60 }
 0x14a   :  { %v293_v2 = vadd.f32 %v292_v0, %v1531_v7 }
 0x14b   :  { %v395_v3 = vmul.f32 0.2, %v220_v62  ;;  %v628_v4 = vpop.f32.mrf.mxu2  ;;  %vm345_vm15 = vcmp.ge.f32.partialorder %v220_v62, 0.0 }
 0x14c   :  { %v396_v6 = vmul.f32 0.2, %v293_v2  ;;  %v629_v8 = vadd.f32 %v1603_v56, %v628_v4  ;;  %v701_v9 = vpop.f32.mrf.mxu3  ;;  %vm346_vm2 = vcmp.ge.f32.partialorder %v293_v2, 0.0 }
 0x14d   :  { %v445_v11 = vsel %vm345_vm15, %v220_v62, %v395_v3 }
 0x14e   :  { %v1643_v12 = vadd.f32 %v701_v9, %v629_v8  ;;  %v471_v13 = vpack.c.bf16 %v445_v11, %v443_v10  ;;  %v446_v15 = vsel %vm346_vm2, %v293_v2, %v396_v6 }
 0x14f   :  { %v472_v17 = vpack.c.bf16 %v446_v15, %v444_v14 }
 0x150   :  { %v222_v18 = vpop.f32.mrf.mxu0  ;;  %670 = vmatmul.bf16.gmra.mxu2 %v471_v13  ;;  %v769_v19 = vsel %vm753_vm0, %v1643_v12, -inf }
 0x151   :  { %743 = vmatmul.bf16.gmra.mxu3 %v472_v17  ;;  %770 = vmax.xlane.f32.xlu2 %v769_v19  ;;  %v295_v20 = vpop.f32.mrf.mxu1  ;;  %v223_v22 = vadd.f32 %v222_v18, %v1529_v5 }
 0x152   :  { %v296_v21 = vadd.f32 %v295_v20, %v1531_v7 }
 0x153   :  { %v631_v23 = vpop.f32.mrf.mxu2  ;;  %v397_v28 = vmul.f32 0.2, %v223_v22  ;;  %vm347_vm4 = vcmp.ge.f32.partialorder %v223_v22, 0.0 }
 0x154   :  { %v632_v24 = vadd.f32 %v1603_v56, %v631_v23  ;;  %v704_v25 = vpop.f32.mrf.mxu3  ;;  %v398_v26 = vmul.f32 0.2, %v296_v21  ;;  %vm348_vm3 = vcmp.ge.f32.partialorder %v296_v21, 0.0 }
 0x155   :  { %v447_v34 = vsel %vm347_vm4, %v223_v22, %v397_v28 }
 0x156   :  { %v1650_v27 = vadd.f32 %v704_v25, %v632_v24  ;;  %v448_v33 = vsel %vm348_vm3, %v296_v21, %v398_v26  ;;  %v473_v38 = vpack.c.bf16 %v447_v34, %v447_v34 }
 0x157   :  { %v474_v36 = vpack.c.bf16 %v448_v33, %v448_v33 }
 0x158   :  { %v224_v30 = vpop.f32.mrf.mxu0  ;;  %v772_v31 = vsel %vm753_vm0, %v1650_v27, -inf }
 0x159   :  { %773 = vmax.xlane.f32.xlu0 %v772_v31  ;;  %v297_v32 = vpop.f32.mrf.mxu1 }
 0x15b   :  { %v633_v7 = vpop.f32.mrf.mxu2 }
 0x15c   :  { %v634_v5 = vadd.f32 %v1603_v56, %v633_v7  ;;  %v706_v35 = vpop.f32.mrf.mxu3 }
 0x15e   :  { %v1655_v37 = vadd.f32 %v706_v35, %v634_v5 }
 0x160   :  { %675 = vmatmul.bf16.gmra.mxu2 %v473_v38  ;;  %v775_v39 = vsel %vm753_vm0, %v1655_v37, -inf }
 0x161   :  { %748 = vmatmul.bf16.gmra.mxu3 %v474_v36  ;;  %776 = vmax.xlane.f32.xlu1 %v775_v39 }
 0x163   :  { %v636_v40 = vpop.f32.mrf.mxu2 }
 0x164   :  { %v637_v41 = vadd.f32 %v1603_v56, %v636_v40  ;;  %v709_v42 = vpop.f32.mrf.mxu3 }
 0x166   :  { %v1660_v43 = vadd.f32 %v709_v42, %v637_v41 }
 0x168   :  { %v778_v45 = vsel %vm753_vm0, %v1660_v43, -inf }
 0x169   :  { %779 = vmax.xlane.f32.xlu2 %v778_v45 }
 0x16b   :  { %v638_v46 = vpop.f32.mrf.mxu2 }
 0x16c   :  { %v639_v47 = vadd.f32 %v1603_v56, %v638_v46  ;;  %v711_v48 = vpop.f32.mrf.mxu3 }
 0x16e   :  { %v1665_v49 = vadd.f32 %v711_v48, %v639_v47 }
 0x170   :  { %v781_v50 = vsel %vm753_vm0, %v1665_v49, -inf }
 0x171   :  { %782 = vmax.xlane.f32.xlu0 %v781_v50 }
 0x173   :  { %v641_v51 = vpop.f32.mrf.mxu2 }
 0x174   :  { %v642_v52 = vadd.f32 %v1603_v56, %v641_v51  ;;  %v714_v53 = vpop.f32.mrf.mxu3 }
 0x176   :  { %v1670_v54 = vadd.f32 %v714_v53, %v642_v52 }
 0x178   :  { %v784_v55 = vsel %vm753_vm0, %v1670_v54, -inf }
 0x179   :  { %785 = vmax.xlane.f32.xlu1 %v784_v55 }
 0x17b   :  { %v643_v57 = vpop.f32.mrf.mxu2 }
 0x17c   :  { %v644_v59 = vadd.f32 %v1603_v56, %v643_v57  ;;  %v716_v60 = vpop.f32.mrf.mxu3 }
 0x17e   :  { %v1675_v61 = vadd.f32 %v716_v60, %v644_v59 }
 0x180   :  { %v787_v62 = vsel %vm753_vm0, %v1675_v61, -inf }
 0x181   :  { %788 = vmax.xlane.f32.xlu2 %v787_v62 }
 0x183   :  { %v646_v0 = vpop.f32.mrf.mxu2 }
 0x184   :  { %v647_v1 = vadd.f32 %v1603_v56, %v646_v0  ;;  %v719_v2 = vpop.f32.mrf.mxu3 }
 0x186   :  { %v1680_v3 = vadd.f32 %v719_v2, %v647_v1 }
 0x188   :  { %v790_v4 = vsel %vm753_vm0, %v1680_v3, -inf }
 0x189   :  { %791 = vmax.xlane.f32.xlu0 %v790_v4 }
 0x18b   :  { %v648_v6 = vpop.f32.mrf.mxu2 }
 0x18c   :  { %v649_v8 = vadd.f32 %v1603_v56, %v648_v6  ;;  %v721_v9 = vpop.f32.mrf.mxu3 }
 0x18e   :  { %v1685_v10 = vadd.f32 %v721_v9, %v649_v8 }
 0x190   :  { %v793_v11 = vsel %vm753_vm0, %v1685_v10, -inf }
 0x191   :  { %794 = vmax.xlane.f32.xlu1 %v793_v11 }
 0x193   :  { %v651_v13 = vpop.f32.mrf.mxu2 }
 0x194   :  { %v652_v14 = vadd.f32 %v1603_v56, %v651_v13  ;;  %v724_v15 = vpop.f32.mrf.mxu3 }
 0x196   :  { %v1690_v17 = vadd.f32 %v724_v15, %v652_v14 }
 0x198   :  { %v796_v18 = vsel %vm753_vm0, %v1690_v17, -inf }
 0x199   :  { %797 = vmax.xlane.f32.xlu2 %v796_v18 }
 0x19b   :  { %v653_v19 = vpop.f32.mrf.mxu2 }
 0x19c   :  { %v654_v20 = vadd.f32 %v1603_v56, %v653_v19  ;;  %v726_v21 = vpop.f32.mrf.mxu3  ;;  %v756_v22 = vpop.xlane.xlu0 %755 }
 0x19d   :  { %v1698_v24 = vsub.f32 %v1608_v63, %v756_v22 }
 0x19e   :  { %v1695_v23 = vadd.f32 %v726_v21, %v654_v20 }
 0x19f   :  { %v854_v26 = vmul.f32 1.442695, %v1698_v24 }
 0x1a0   :  { %v799_v25 = vsel %vm753_vm0, %v1695_v23, -inf }
 0x1a1   :  { %800 = vmax.xlane.f32.xlu0 %v799_v25  ;;  %1230 = vpow2.f32 %v854_v26 }
 0x1a3   :  { %v656_v28 = vpop.f32.mrf.mxu2 }
 0x1a4   :  { %v657_v30 = vadd.f32 %v1603_v56, %v656_v28  ;;  %v729_v31 = vpop.f32.mrf.mxu3  ;;  %v759_v32 = vpop.xlane.xlu0 %758 }
 0x1a5   :  { %v1707_v7 = vsub.f32 %v1615_v16, %v759_v32 }
 0x1a6   :  { %v1704_v33 = vadd.f32 %v729_v31, %v657_v30 }
 0x1a7   :  { %v856_v34 = vmul.f32 1.442695, %v1707_v7  ;;  %v1231_v39 = vpop.eup %1230 }
 0x1a8   :  { %v802_v63 = vsel %vm753_vm0, %v1704_v33, -inf  ;;  %v904_v42 = vsel %vm753_vm0, %v1231_v39, 0.0 }
 0x1a9   :  { %803 = vmax.xlane.f32.xlu1 %v802_v63  ;;  %1232 = vpow2.f32 %v856_v34 }
 0x1ab   :  { %v658_v5 = vpop.f32.mrf.mxu2 }
 0x1ac   :  { %v659_v35 = vadd.f32 %v1603_v56, %v658_v5  ;;  %v731_v36 = vpop.f32.mrf.mxu3  ;;  %v762_v38 = vpop.xlane.xlu1 %761 }
 0x1ad   :  { %v1716_v41 = vsub.f32 %v1622_v29, %v762_v38 }
 0x1ae   :  { %v1713_v40 = vadd.f32 %v731_v36, %v659_v35 }
 0x1af   :  { %v858_v45 = vmul.f32 1.442695, %v1716_v41  ;;  %v1233_v51 = vpop.eup %1232 }
 0x1b0   :  { %v805_v16 = vsel %vm753_vm0, %v1713_v40, -inf  ;;  %v907_v55 = vsel %vm753_vm0, %v1233_v51, 0.0 }
 0x1b1   :  { %806 = vmax.xlane.f32.xlu2 %v805_v16  ;;  %905 = vadd.xlane.f32.xlu1 %v904_v42  ;;  %1234 = vpow2.f32 %v858_v45 }
 0x1b3   :  { %v661_v46 = vpop.f32.mrf.mxu2 }
 0x1b4   :  { %v662_v47 = vadd.f32 %v1603_v56, %v661_v46  ;;  %v734_v48 = vpop.f32.mrf.mxu3  ;;  %v765_v50 = vpop.xlane.xlu1 %764 }
 0x1b5   :  { %v1726_v29 = vsub.f32 %v1629_v44, %v765_v50 }
 0x1b6   :  { %v1723_v52 = vadd.f32 %v734_v48, %v662_v47 }
 0x1b7   :  { %v860_v57 = vmul.f32 1.442695, %v1726_v29  ;;  %v1235_v0 = vpop.eup %1234 }
 0x1b8   :  { %v808_v53 = vsel %vm753_vm0, %v1723_v52, -inf  ;;  %v910_v44 = vsel %vm753_vm0, %v1235_v0, 0.0 }
 0x1b9   :  { %809 = vmax.xlane.f32.xlu0 %v808_v53  ;;  %908 = vadd.xlane.f32.xlu2 %v907_v55  ;;  %1236 = vpow2.f32 %v860_v57 }
 0x1bb   :  { %v663_v59 = vpop.f32.mrf.mxu2 }
 0x1bc   :  { %v664_v60 = vadd.f32 %v1603_v56, %v663_v59  ;;  %v736_v62 = vpop.f32.mrf.mxu3  ;;  %v768_v26 = vpop.xlane.xlu2 %767 }
 0x1bd   :  { %v1757_v34 = vsub.f32 %v1636_v58, %v768_v26 }
 0x1be   :  { %v1733_v1 = vadd.f32 %v736_v62, %v664_v60 }
 0x1bf   :  { %v1237_v9 = vpop.eup %1236  ;;  %v862_v5 = vmul.f32 1.442695, %v1757_v34 }
 0x1c0   :  { %v811_v2 = vsel %vm753_vm0, %v1733_v1, -inf  ;;  %v913_v13 = vsel %vm753_vm0, %v1237_v9, 0.0 }
 0x1c1   :  { %911 = vadd.xlane.f32.xlu0 %v910_v44  ;;  %812 = vmax.xlane.f32.xlu1 %v811_v2 }
 0x1c3   :  { %v666_v4 = vpop.f32.mrf.mxu2 }
 0x1c4   :  { %v667_v6 = vadd.f32 %v1603_v56, %v666_v4  ;;  %v739_v8 = vpop.f32.mrf.mxu3  ;;  %v771_v35 = vpop.xlane.xlu2 %770 }
 0x1c5   :  { %v1764_v45 = vsub.f32 %v1643_v12, %v771_v35 }
 0x1c6   :  { %v1739_v11 = vadd.f32 %v739_v8, %v667_v6 }
 0x1c7   :  { %v864_v50 = vmul.f32 1.442695, %v1764_v45 }
 0x1c8   :  { %v814_v14 = vsel %vm753_vm0, %v1739_v11, -inf }
 0x1c9   :  { %914 = vadd.xlane.f32.xlu1 %v913_v13  ;;  %815 = vmax.xlane.f32.xlu2 %v814_v14 }
 0x1cb   :  { %v668_v15 = vpop.f32.mrf.mxu2 }
 0x1cc   :  { %v669_v18 = vadd.f32 %v1603_v56, %v668_v15  ;;  %v741_v19 = vpop.f32.mrf.mxu3  ;;  %v774_v20 = vpop.xlane.xlu0 %773 }
 0x1cd   :  { %v1748_v22 = vsub.f32 %v1650_v27, %v774_v20 }
 0x1ce   :  { %v1745_v21 = vadd.f32 %v741_v19, %v669_v18 }
 0x1cf   :  { %v866_v28 = vmul.f32 1.442695, %v1748_v22 }
 0x1d0   :  { %v817_v25 = vsel %vm753_vm0, %v1745_v21, -inf }
 0x1d1   :  { %818 = vmax.xlane.f32.xlu0 %v817_v25  ;;  %1238 = vpow2.f32 %v866_v28 }
 0x1d2   :  { %1240 = vpow2.f32 %v862_v5 }
 0x1d3   :  { %v671_v30 = vpop.f32.mrf.mxu2  ;;  %1242 = vpow2.f32 %v864_v50 }
 0x1d4   :  { %v672_v31 = vadd.f32 %v1603_v56, %v671_v30  ;;  %v744_v32 = vpop.f32.mrf.mxu3  ;;  %v777_v38 = vpop.xlane.xlu1 %776 }
 0x1d5   :  { %v1769_v58 = vsub.f32 %v1655_v37, %v777_v38 }
 0x1d6   :  { %v1754_v63 = vadd.f32 %v744_v32, %v672_v31 }
 0x1d7   :  { %v1239_v42 = vpop.eup %1238  ;;  %v868_v51 = vmul.f32 1.442695, %v1769_v58 }
 0x1d8   :  { %v820_v27 = vsel %vm753_vm0, %v1754_v63, -inf  ;;  %v922_v48 = vsel %vm753_vm0, %v1239_v42, 0.0  ;;  %v1241_v60 = vpop.eup %1240 }
 0x1d9   :  { %821 = vmax.xlane.f32.xlu1 %v820_v27  ;;  %1244 = vpow2.f32 %v868_v51  ;;  %v1243_v6 = vpop.eup %1242 }
 0x1da   :  { %v919_v18 = vsel %vm753_vm0, %v1243_v6, 0.0 }
 0x1db   :  { %v673_v36 = vpop.f32.mrf.mxu2 }
 0x1dc   :  { %v674_v39 = vadd.f32 %v1603_v56, %v673_v36  ;;  %v746_v16 = vpop.f32.mrf.mxu3  ;;  %v780_v53 = vpop.xlane.xlu2 %779 }
 0x1dd   :  { %v1783_v0 = vsub.f32 %v1660_v43, %v780_v53 }
 0x1de   :  { %v1766_v46 = vadd.f32 %v746_v16, %v674_v39 }
 0x1df   :  { %v1245_v13 = vpop.eup %1244 }
 0x1e0   :  { %v823_v47 = vsel %vm753_vm0, %v1766_v46, -inf  ;;  %v925_v19 = vsel %vm753_vm0, %v1245_v13, 0.0 }
 0x1e1   :  { %824 = vmax.xlane.f32.xlu2 %v823_v47  ;;  %923 = vadd.xlane.f32.xlu1 %v922_v48 }
 0x1e3   :  { %v676_v12 = vpop.f32.mrf.mxu2 }
 0x1e4   :  { %v677_v55 = vadd.f32 %v1603_v56, %v676_v12  ;;  %v749_v57 = vpop.f32.mrf.mxu3  ;;  %v783_v59 = vpop.xlane.xlu0 %782  ;;  %v916_v56 = vsel %vm753_vm0, %v1241_v60, 0.0 }
 0x1e5   :  { %v1778_v37 = vsub.f32 %v1665_v49, %v783_v59  ;;  %v870_v49 = vmul.f32 1.442695, %v1783_v0 }
 0x1e6   :  { %v1780_v62 = vadd.f32 %v749_v57, %v677_v55 }
 0x1e7   :  { %v872_v44 = vmul.f32 1.442695, %v1778_v37 }
 0x1e8   :  { %v826_v2 = vsel %vm753_vm0, %v1780_v62, -inf }
 0x1e9   :  { %1246 = vpow2.f32 %v872_v44  ;;  %827 = vmax.xlane.f32.xlu0 %v826_v2  ;;  %917 = vadd.xlane.f32.xlu2 %v916_v56 }
 0x1ea   :  { %1248 = vpow2.f32 %v870_v49 }
 0x1eb   :  { %v678_v4 = vpop.f32.mrf.mxu2 }
 0x1ec   :  { %v751_v8 = vpop.f32.mrf.mxu3  ;;  %v786_v9 = vpop.xlane.xlu1 %785 }
 0x1ed   :  { %v1791_v43 = vsub.f32 %v1670_v54, %v786_v9 }
 0x1ef   :  { %v1247_v14 = vpop.eup %1246  ;;  %v874_v15 = vmul.f32 1.442695, %v1791_v43 }
 0x1f0   :  { %v931_v20 = vsel %vm753_vm0, %v1247_v14, 0.0  ;;  %v1249_v26 = vpop.eup %1248 }
 0x1f1   :  { %1250 = vpow2.f32 %v874_v15  ;;  %920 = vadd.xlane.f32.xlu0 %v919_v18  ;;  %926 = vadd.xlane.f32.xlu2 %v925_v19  ;;  %v928_v31 = vsel %vm753_vm0, %v1249_v26, 0.0 }
 0x1f2   :  { %932 = vadd.xlane.f32.xlu1 %v931_v20 }
 0x1f4   :  { %v789_v25 = vpop.xlane.xlu2 %788 }
 0x1f5   :  { %v1798_v28 = vsub.f32 %v1675_v61, %v789_v25 }
 0x1f7   :  { %v1251_v54 = vpop.eup %1250  ;;  %v876_v30 = vmul.f32 1.442695, %v1798_v28 }
 0x1f8   :  { %v934_v32 = vsel %vm753_vm0, %v1251_v54, 0.0 }
 0x1f9   :  { %1252 = vpow2.f32 %v876_v30  ;;  %929 = vadd.xlane.f32.xlu0 %v928_v31  ;;  %935 = vadd.xlane.f32.xlu2 %v934_v32 }
 0x1fc   :  { %v792_v27 = vpop.xlane.xlu0 %791 }
 0x1fd   :  { %v1804_v5 = vsub.f32 %v1680_v3, %v792_v27 }
 0x1ff   :  { %v1253_v35 = vpop.eup %1252  ;;  %v878_v36 = vmul.f32 1.442695, %v1804_v5 }
 0x200   :  { %v937_v61 = vsel %vm753_vm0, %v1253_v35, 0.0 }
 0x201   :  { %1254 = vpow2.f32 %v878_v36  ;;  %938 = vadd.xlane.f32.xlu0 %v937_v61 }
 0x204   :  { %v795_v38 = vpop.xlane.xlu1 %794 }
 0x205   :  { %v1809_v39 = vsub.f32 %v1685_v10, %v795_v38 }
 0x207   :  { %v1255_v16 = vpop.eup %1254  ;;  %v880_v42 = vmul.f32 1.442695, %v1809_v39 }
 0x208   :  { %v940_v47 = vsel %vm753_vm0, %v1255_v16, 0.0 }
 0x209   :  { %1256 = vpow2.f32 %v880_v42  ;;  %941 = vadd.xlane.f32.xlu1 %v940_v47 }
 0x20c   :  { %v798_v3 = vpop.xlane.xlu2 %797 }
 0x20d   :  { %v1814_v48 = vsub.f32 %v1690_v17, %v798_v3 }
 0x20f   :  { %v1257_v50 = vpop.eup %1256  ;;  %v882_v51 = vmul.f32 1.442695, %v1814_v48 }
 0x210   :  { %v943_v53 = vsel %vm753_vm0, %v1257_v50, 0.0 }
 0x211   :  { %1258 = vpow2.f32 %v882_v51  ;;  %944 = vadd.xlane.f32.xlu2 %v943_v53 }
 0x214   :  { %v801_v10 = vpop.xlane.xlu0 %800 }
 0x215   :  { %v1819_v12 = vsub.f32 %v1695_v23, %v801_v10 }
 0x217   :  { %v1259_v55 = vpop.eup %1258  ;;  %v884_v57 = vmul.f32 1.442695, %v1819_v12 }
 0x218   :  { %v946_v59 = vsel %vm753_vm0, %v1259_v55, 0.0 }
 0x219   :  { %1260 = vpow2.f32 %v884_v57  ;;  %947 = vadd.xlane.f32.xlu0 %v946_v59 }
 0x21c   :  { %v804_v17 = vpop.xlane.xlu1 %803 }
 0x21d   :  { %v1824_v60 = vsub.f32 %v1704_v33, %v804_v17 }
 0x21f   :  { %v1261_v44 = vpop.eup %1260  ;;  %v886_v2 = vmul.f32 1.442695, %v1824_v60 }
 0x220   :  { %v949_v56 = vsel %vm753_vm0, %v1261_v44, 0.0 }
 0x221   :  { %1262 = vpow2.f32 %v886_v2  ;;  %950 = vadd.xlane.f32.xlu1 %v949_v56 }
 0x224   :  { %v807_v23 = vpop.xlane.xlu2 %806  ;;  %v906_v49 = vpop.xlane.xlu1 %905 }
 0x225   :  { %v1829_v4 = vsub.f32 %v1713_v40, %v807_v23  ;;  %1264 = vlog2.f32 %v906_v49 }
 0x227   :  { %v1263_v6 = vpop.eup %1262  ;;  %v888_v8 = vmul.f32 1.442695, %v1829_v4 }
 0x228   :  { %v952_v9 = vsel %vm753_vm0, %v1263_v6, 0.0 }
 0x229   :  { %1266 = vpow2.f32 %v888_v8  ;;  %953 = vadd.xlane.f32.xlu2 %v952_v9 }
 0x22b   :  { %v1265_v33 = vpop.eup %1264 }
 0x22c   :  { %v980_v13 = vmul.f32 0.6931472, %v1265_v33  ;;  %v909_v14 = vpop.xlane.xlu2 %908  ;;  %v810_v15 = vpop.xlane.xlu0 %809 }
 0x22d   :  { %1268 = vlog2.f32 %v909_v14  ;;  %v1834_v18 = vsub.f32 %v1723_v52, %v810_v15 }
 0x22e   :  { %v1029_v19 = vsub.f32 %v1698_v24, %v980_v13 }
 0x22f   :  { %v1267_v40 = vpop.eup %1266  ;;  %v890_v20 = vmul.f32 1.442695, %v1834_v18 }
 0x230   :  { %1054 = vst.msk [vmem:[%s1999_s5] sm:$0xff] %vm753_vm0, %v1029_v19  ;;  %v955_v25 = vsel %vm753_vm0, %v1267_v40, 0.0 }
 0x231   :  { %1270 = vpow2.f32 %v890_v20  ;;  %956 = vadd.xlane.f32.xlu0 %v955_v25 }
 0x233   :  { %v1269_v26 = vpop.eup %1268 }
 0x234   :  { %v982_v54 = vmul.f32 0.6931472, %v1269_v26  ;;  %v813_v30 = vpop.xlane.xlu1 %812  ;;  %v912_v31 = vpop.xlane.xlu0 %911 }
 0x235   :  { %v1844_v52 = vsub.f32 %v1733_v1, %v813_v30  ;;  %1272 = vlog2.f32 %v912_v31 }
 0x236   :  { %v1030_v24 = vsub.f32 %v1707_v7, %v982_v54 }
 0x237   :  { %v1271_v32 = vpop.eup %1270  ;;  %v892_v27 = vmul.f32 1.442695, %v1844_v52 }
 0x238   :  { %1055 = vst.msk [vmem:[%s1999_s5 + $0x8] sm:$0xff] %vm753_vm0, %v1030_v24  ;;  %v958_v35 = vsel %vm753_vm0, %v1271_v32, 0.0 }
 0x239   :  { %1274 = vpow2.f32 %v892_v27  ;;  %959 = vadd.xlane.f32.xlu1 %v958_v35 }
 0x23b   :  { %v1273_v36 = vpop.eup %1272 }
 0x23c   :  { %v984_v61 = vmul.f32 0.6931472, %v1273_v36  ;;  %v915_v38 = vpop.xlane.xlu1 %914  ;;  %v816_v1 = vpop.xlane.xlu2 %815 }
 0x23d   :  { %1276 = vlog2.f32 %v915_v38  ;;  %v1854_v16 = vsub.f32 %v1739_v11, %v816_v1 }
 0x23e   :  { %v1031_v7 = vsub.f32 %v1716_v41, %v984_v61 }
 0x23f   :  { %v1275_v42 = vpop.eup %1274  ;;  %v894_v47 = vmul.f32 1.442695, %v1854_v16 }
 0x240   :  { %1056 = vst.msk [vmem:[%s1999_s5 + $0x10] sm:$0xff] %vm753_vm0, %v1031_v7  ;;  %v961_v3 = vsel %vm753_vm0, %v1275_v42, 0.0 }
 0x241   :  { %1278 = vpow2.f32 %v894_v47  ;;  %962 = vadd.xlane.f32.xlu2 %v961_v3 }
 0x243   :  { %v1277_v50 = vpop.eup %1276 }
 0x244   :  { %v986_v51 = vmul.f32 0.6931472, %v1277_v50  ;;  %v819_v53 = vpop.xlane.xlu0 %818 }
 0x245   :  { %v1864_v11 = vsub.f32 %v1745_v21, %v819_v53 }
 0x246   :  { %v1032_v41 = vsub.f32 %v1726_v29, %v986_v51 }
 0x247   :  { %v1279_v10 = vpop.eup %1278  ;;  %v896_v55 = vmul.f32 1.442695, %v1864_v11 }
 0x248   :  { %1057 = vst.msk [vmem:[%s1999_s5 + $0x18] sm:$0xff] %vm753_vm0, %v1032_v41  ;;  %v964_v57 = vsel %vm753_vm0, %v1279_v10, 0.0 }
 0x249   :  { %1280 = vpow2.f32 %v896_v55  ;;  %965 = vadd.xlane.f32.xlu0 %v964_v57 }
 0x24c   :  { %v822_v59 = vpop.xlane.xlu1 %821 }
 0x24d   :  { %v1874_v17 = vsub.f32 %v1754_v63, %v822_v59 }
 0x24f   :  { %v1281_v21 = vpop.eup %1280  ;;  %v898_v44 = vmul.f32 1.442695, %v1874_v17 }
 0x250   :  { %v967_v29 = vsel %vm753_vm0, %v1281_v21, 0.0 }
 0x251   :  { %1282 = vpow2.f32 %v898_v44  ;;  %968 = vadd.xlane.f32.xlu1 %v967_v29 }
 0x254   :  { %v825_v2 = vpop.xlane.xlu2 %824  ;;  %v924_v56 = vpop.xlane.xlu1 %923 }
 0x255   :  { %v1879_v23 = vsub.f32 %v1766_v46, %v825_v2  ;;  %1284 = vlog2.f32 %v924_v56 }
 0x257   :  { %v1283_v49 = vpop.eup %1282  ;;  %v900_v6 = vmul.f32 1.442695, %v1879_v23 }
 0x258   :  { %v970_v8 = vsel %vm753_vm0, %v1283_v49, 0.0 }
 0x259   :  { %1286 = vpow2.f32 %v900_v6  ;;  %971 = vadd.xlane.f32.xlu2 %v970_v8 }
 0x25b   :  { %v1285_v63 = vpop.eup %1284 }
 0x25c   :  { %v992_v9 = vmul.f32 0.6931472, %v1285_v63  ;;  %v918_v33 = vpop.xlane.xlu2 %917  ;;  %v828_v13 = vpop.xlane.xlu0 %827 }
 0x25d   :  { %1288 = vlog2.f32 %v918_v33  ;;  %v1884_v14 = vsub.f32 %v1780_v62, %v828_v13 }
 0x25e   :  { %v1035_v15 = vsub.f32 %v1748_v22, %v992_v9 }
 0x25f   :  { %v1287_v46 = vpop.eup %1286  ;;  %v902_v19 = vmul.f32 1.442695, %v1884_v14 }
 0x260   :  { %1060 = vst.msk [vmem:[%s1999_s5 + $0x30] sm:$0xff] %vm753_vm0, %v1035_v15  ;;  %v973_v40 = vsel %vm753_vm0, %v1287_v46, 0.0 }
 0x261   :  { %1290 = vpow2.f32 %v902_v19  ;;  %974 = vadd.xlane.f32.xlu0 %v973_v40 }
 0x263   :  { %v1289_v20 = vpop.eup %1288 }
 0x264   :  { %v988_v25 = vmul.f32 0.6931472, %v1289_v20  ;;  %v927_v26 = vpop.xlane.xlu2 %926  ;;  %v921_v54 = vpop.xlane.xlu0 %920 }
 0x265   :  { %1292 = vlog2.f32 %v927_v26  ;;  %v933_v62 = vpop.xlane.xlu1 %932 }
 0x266   :  { %v1033_v22 = vsub.f32 %v1757_v34, %v988_v25  ;;  %1294 = vlog2.f32 %v933_v62 }
 0x267   :  { %v1291_v30 = vpop.eup %1290  ;;  %1296 = vlog2.f32 %v921_v54 }
 0x268   :  { %1058 = vst.msk [vmem:[%s1999_s5 + $0x20] sm:$0xff] %vm753_vm0, %v1033_v22  ;;  %v976_v31 = vsel %vm753_vm0, %v1291_v30, 0.0 }
 0x269   :  { %977 = vadd.xlane.f32.xlu1 %v976_v31 }
 0x26b   :  { %v1293_v24 = vpop.eup %1292 }
 0x26c   :  { %v1295_v32 = vpop.eup %1294  ;;  %v994_v27 = vmul.f32 0.6931472, %v1293_v24  ;;  %v936_v35 = vpop.xlane.xlu2 %935 }
 0x26d   :  { %v930_v36 = vpop.xlane.xlu0 %929  ;;  %v1297_v61 = vpop.eup %1296  ;;  %v998_v38 = vmul.f32 0.6931472, %v1295_v32  ;;  %1298 = vlog2.f32 %v936_v35 }
 0x26e   :  { %v1036_v34 = vsub.f32 %v1769_v58, %v994_v27  ;;  %v990_v1 = vmul.f32 0.6931472, %v1297_v61  ;;  %1300 = vlog2.f32 %v930_v36 }
 0x26f   :  { %v1038_v7 = vsub.f32 %v1778_v37, %v998_v38 }
 0x270   :  { %1061 = vst.msk [vmem:[%s1999_s5 + $0x38] sm:$0xff] %vm753_vm0, %v1036_v34  ;;  %v1034_v42 = vsub.f32 %v1764_v45, %v990_v1 }
 0x271   :  { %1063 = vst.msk [vmem:[%s1999_s5 + $0x48] sm:$0xff] %vm753_vm0, %v1038_v7 }
 0x272   :  { %1059 = vst.msk [vmem:[%s1999_s5 + $0x28] sm:$0xff] %vm753_vm0, %v1034_v42 }
 0x273   :  { %v1299_v58 = vpop.eup %1298 }
 0x274   :  { %v1301_v47 = vpop.eup %1300  ;;  %v1000_v37 = vmul.f32 0.6931472, %v1299_v58 }
 0x275   :  { %v939_v3 = vpop.xlane.xlu0 %938  ;;  %v996_v50 = vmul.f32 0.6931472, %v1301_v47 }
 0x276   :  { %1302 = vlog2.f32 %v939_v3  ;;  %v1039_v51 = vsub.f32 %v1791_v43, %v1000_v37 }
 0x277   :  { %v1037_v45 = vsub.f32 %v1783_v0, %v996_v50 }
 0x278   :  { %1064 = vst.msk [vmem:[%s1999_s5 + $0x50] sm:$0xff] %vm753_vm0, %v1039_v51 }
 0x279   :  { %1062 = vst.msk [vmem:[%s1999_s5 + $0x40] sm:$0xff] %vm753_vm0, %v1037_v45 }
 0x27c   :  { %v1303_v53 = vpop.eup %1302  ;;  %v942_v10 = vpop.xlane.xlu1 %941 }
 0x27d   :  { %v1002_v41 = vmul.f32 0.6931472, %v1303_v53  ;;  %1304 = vlog2.f32 %v942_v10 }
 0x27f   :  { %v1040_v55 = vsub.f32 %v1798_v28, %v1002_v41 }
 0x281   :  { %1065 = vst.msk [vmem:[%s1999_s5 + $0x58] sm:$0xff] %vm753_vm0, %v1040_v55 }
 0x283   :  { %v1305_v0 = vpop.eup %1304 }
 0x284   :  { %v1004_v43 = vmul.f32 0.6931472, %v1305_v0  ;;  %v945_v57 = vpop.xlane.xlu2 %944 }
 0x285   :  { %1306 = vlog2.f32 %v945_v57 }
 0x286   :  { %v1041_v59 = vsub.f32 %v1804_v5, %v1004_v43 }
 0x288   :  { %1066 = vst.msk [vmem:[%s1999_s5 + $0x60] sm:$0xff] %vm753_vm0, %v1041_v59 }
 0x28b   :  { %v1307_v21 = vpop.eup %1306 }
 0x28c   :  { %v1006_v44 = vmul.f32 0.6931472, %v1307_v21  ;;  %v948_v29 = vpop.xlane.xlu0 %947 }
 0x28d   :  { %1308 = vlog2.f32 %v948_v29 }
 0x28e   :  { %v1042_v28 = vsub.f32 %v1809_v39, %v1006_v44 }
 0x290   :  { %1067 = vst.msk [vmem:[%s1999_s5 + $0x68] sm:$0xff] %vm753_vm0, %v1042_v28 }
 0x293   :  { %v1309_v2 = vpop.eup %1308 }
 0x294   :  { %v1008_v56 = vmul.f32 0.6931472, %v1309_v2  ;;  %v951_v49 = vpop.xlane.xlu1 %950 }
 0x295   :  { %1310 = vlog2.f32 %v951_v49 }
 0x296   :  { %v1043_v5 = vsub.f32 %v1814_v48, %v1008_v56 }
 0x298   :  { %1068 = vst.msk [vmem:[%s1999_s5 + $0x70] sm:$0xff] %vm753_vm0, %v1043_v5 }
 0x29b   :  { %v1311_v6 = vpop.eup %1310 }
 0x29c   :  { %v1010_v8 = vmul.f32 0.6931472, %v1311_v6  ;;  %v954_v63 = vpop.xlane.xlu2 %953 }
 0x29d   :  { %1312 = vlog2.f32 %v954_v63 }
 0x29e   :  { %v1044_v39 = vsub.f32 %v1819_v12, %v1010_v8 }
 0x2a0   :  { %1069 = vst.msk [vmem:[%s1999_s5 + $0x78] sm:$0xff] %vm753_vm0, %v1044_v39 }
 0x2a3   :  { %v1313_v9 = vpop.eup %1312 }
 0x2a4   :  { %v1012_v33 = vmul.f32 0.6931472, %v1313_v9  ;;  %v957_v13 = vpop.xlane.xlu0 %956 }
 0x2a5   :  { %1314 = vlog2.f32 %v957_v13 }
 0x2a6   :  { %v1045_v48 = vsub.f32 %v1824_v60, %v1012_v33 }
 0x2a8   :  { %1070 = vst.msk [vmem:[%s1999_s5 + $0x80] sm:$0xff] %vm753_vm0, %v1045_v48 }
 0x2ab   :  { %v1315_v15 = vpop.eup %1314 }
 0x2ac   :  { %v1014_v46 = vmul.f32 0.6931472, %v1315_v15  ;;  %v960_v19 = vpop.xlane.xlu1 %959 }
 0x2ad   :  { %1316 = vlog2.f32 %v960_v19 }
 0x2ae   :  { %v1046_v12 = vsub.f32 %v1829_v4, %v1014_v46 }
 0x2b0   :  { %1071 = vst.msk [vmem:[%s1999_s5 + $0x88] sm:$0xff] %vm753_vm0, %v1046_v12 }
 0x2b3   :  { %v1317_v40 = vpop.eup %1316 }
 0x2b4   :  { %v1016_v20 = vmul.f32 0.6931472, %v1317_v40  ;;  %v963_v25 = vpop.xlane.xlu2 %962 }
 0x2b5   :  { %1318 = vlog2.f32 %v963_v25 }
 0x2b6   :  { %v1047_v60 = vsub.f32 %v1834_v18, %v1016_v20 }
 0x2b8   :  { %1072 = vst.msk [vmem:[%s1999_s5 + $0x90] sm:$0xff] %vm753_vm0, %v1047_v60 }
 0x2bb   :  { %v1319_v26 = vpop.eup %1318 }
 0x2bc   :  { %v1018_v54 = vmul.f32 0.6931472, %v1319_v26  ;;  %v966_v62 = vpop.xlane.xlu0 %965 }
 0x2bd   :  { %1320 = vlog2.f32 %v966_v62 }
 0x2be   :  { %v1048_v4 = vsub.f32 %v1844_v52, %v1018_v54 }
 0x2c0   :  { %1073 = vst.msk [vmem:[%s1999_s5 + $0x98] sm:$0xff] %vm753_vm0, %v1048_v4 }
 0x2c3   :  { %v1321_v22 = vpop.eup %1320 }
 0x2c4   :  { %v1020_v30 = vmul.f32 0.6931472, %v1321_v22  ;;  %v969_v31 = vpop.xlane.xlu1 %968 }
 0x2c5   :  { %1322 = vlog2.f32 %v969_v31 }
 0x2c6   :  { %v1049_v18 = vsub.f32 %v1854_v16, %v1020_v30 }
 0x2c8   :  { %1074 = vst.msk [vmem:[%s1999_s5 + $0xa0] sm:$0xff] %vm753_vm0, %v1049_v18 }
 0x2cb   :  { %v1323_v24 = vpop.eup %1322 }
 0x2cc   :  { %v1022_v32 = vmul.f32 0.6931472, %v1323_v24  ;;  %v972_v27 = vpop.xlane.xlu2 %971 }
 0x2cd   :  { %1324 = vlog2.f32 %v972_v27 }
 0x2ce   :  { %v1050_v52 = vsub.f32 %v1864_v11, %v1022_v32 }
 0x2d0   :  { %1075 = vst.msk [vmem:[%s1999_s5 + $0xa8] sm:$0xff] %vm753_vm0, %v1050_v52 }
 0x2d3   :  { %v1325_v35 = vpop.eup %1324 }
 0x2d4   :  { %v1024_v36 = vmul.f32 0.6931472, %v1325_v35  ;;  %v975_v61 = vpop.xlane.xlu0 %974 }
 0x2d5   :  { %1326 = vlog2.f32 %v975_v61 }
 0x2d6   :  { %v1051_v16 = vsub.f32 %v1874_v17, %v1024_v36 }
 0x2d8   :  { %1076 = vst.msk [vmem:[%s1999_s5 + $0xb0] sm:$0xff] %vm753_vm0, %v1051_v16 }
 0x2db   :  { %v1327_v38 = vpop.eup %1326 }
 0x2dc   :  { %v1026_v34 = vmul.f32 0.6931472, %v1327_v38  ;;  %v978_v1 = vpop.xlane.xlu1 %977 }
 0x2dd   :  { %1328 = vlog2.f32 %v978_v1 }
 0x2de   :  { %v1052_v11 = vsub.f32 %v1879_v23, %v1026_v34 }
 0x2e0   :  { %1077 = vst.msk [vmem:[%s1999_s5 + $0xb8] sm:$0xff] %vm753_vm0, %v1052_v11 }
 0x2e3   :  { %v1329_v7 = vpop.eup %1328 }
 0x2e4   :  { %v1028_v42 = vmul.f32 0.6931472, %v1329_v7 }
 0x2e6   :  { %v1053_v17 = vsub.f32 %v1884_v14, %v1028_v42 }
 0x2e8   :  { %1078 = vst.msk [vmem:[%s1999_s5 + $0xc0] sm:$0xff] %vm753_vm0, %v1053_v17 }

</bundles_post_ra>
